<compile_context>
chip_gen: v7x
topology: tpu7x:2x2x1
jax: 0.10.0
libtpu: 0.0.40
codegen_flags: <defaults>
</compile_context>

<pallas_src>
import functools

import jax
import jax.numpy as jnp
from jax.experimental import pallas as pl
from jax.experimental.pallas import tpu as pltpu


def _round_up(x, m):
    return ((x + m - 1) // m) * m


def _cdiv(a, b):
    return -(-a // b)


# Explicit VMEM cap: safe headroom on v5e/v6e (128 MiB) and v7x (64 MiB).
_VMEM_LIMIT = 48 * 1024 * 1024


# --------------------------------------------------------------------------
# Kernel 1: per-point linear layer (the `transforms` FCLayer_snn, SNN -> ReLU)
# --------------------------------------------------------------------------
def _linear_kernel(x_ref, w_ref, b_ref, o_ref, *, relu):
    h = jnp.dot(x_ref[...], w_ref[...],
                preferred_element_type=jnp.float32) + b_ref[...]
    if relu:
        h = jnp.maximum(h, 0.0)
    o_ref[...] = h


def linear_pallas(x2d, w, b, *, relu, max_tile=2048):
    """x2d: (R, Cin) -> (R, Cout).  Rows padded to a tile multiple."""
    R, cin = x2d.shape
    cout = w.shape[1]
    # Big tiles (amortize ~0.35us/grid-step) but always >=2 blocks when R allows
    # so both v7x TensorCores get work.
    tile = max(8, min(max_tile, _round_up(_cdiv(R, 2), 8)))
    r_pad = _round_up(R, tile)
    if r_pad != R:
        x2d = jnp.pad(x2d, ((0, r_pad - R), (0, 0)))
    out = pl.pallas_call(
        functools.partial(_linear_kernel, relu=relu),
        out_shape=jax.ShapeDtypeStruct((r_pad, cout), jnp.float32),
        grid=(r_pad // tile,),
        in_specs=[pl.BlockSpec((tile, cin), lambda i: (i, 0)),
                  pl.BlockSpec(w.shape, lambda i: (0, 0)),
                  pl.BlockSpec(b.shape, lambda i: (0, 0))],
        out_specs=pl.BlockSpec((tile, cout), lambda i: (i, 0)),
        compiler_params=pltpu.CompilerParams(
            dimension_semantics=("parallel",),
            vmem_limit_bytes=_VMEM_LIMIT),
    )(x2d, w, b)
    return out[:R]


# --------------------------------------------------------------------------
# Kernel 2: pairwise squared distances, tiled over query rows
# --------------------------------------------------------------------------
def _pdist_kernel(q_ref, kt_ref, qn_ref, kn_ref, out_ref):
    q = q_ref[0]                                        # (ti, D) f32 queries
    kt = kt_ref[0]                                      # (D, N)  bf16 keys (transposed)
    # Fold -2 into the (small) query tile; bf16 operands feed the MXU with f32
    # accumulation.  Norms are precomputed once in the wrapper.
    qs = (q * -2.0).astype(jnp.bfloat16)
    cross = jnp.dot(qs, kt, preferred_element_type=jnp.float32)   # (ti, N) = -2 q.k
    out_ref[0] = qn_ref[0] + kn_ref[0] + cross


def pairwise_sqdist(pos, *, row_tile=512):
    """pos: (B, N, D) -> (B, N, N) squared distances (||q||^2 + ||k||^2 - 2 q.k)."""
    B, N, D = pos.shape
    # Always tile the query rows (no single-(1,N,N)-block fallback -> bounded
    # VMEM on v7x for any N) and keep >=2 row blocks when possible.
    ti = max(8, min(row_tile, _round_up(_cdiv(N, 2), 8)))
    n_pad = _round_up(N, ti)
    q = pos if n_pad == N else jnp.pad(pos, ((0, 0), (0, n_pad - N), (0, 0)))
    qn = jnp.sum(q * q, axis=-1, keepdims=True)                          # (B, n_pad, 1)
    kn = jnp.swapaxes(jnp.sum(pos * pos, axis=-1, keepdims=True), 1, 2)  # (B, 1, N)
    kt = jnp.swapaxes(pos, 1, 2).astype(jnp.bfloat16)                    # (B, D, N)
    out = pl.pallas_call(
        _pdist_kernel,
        out_shape=jax.ShapeDtypeStruct((B, n_pad, N), jnp.float32),
        grid=(B, n_pad // ti),
        in_specs=[pl.BlockSpec((1, ti, D), lambda b, i: (b, i, 0)),
                  pl.BlockSpec((1, D, N), lambda b, i: (b, 0, 0)),
                  pl.BlockSpec((1, ti, 1), lambda b, i: (b, i, 0)),
                  pl.BlockSpec((1, 1, N), lambda b, i: (b, 0, 0))],
        out_specs=pl.BlockSpec((1, ti, N), lambda b, i: (b, i, 0)),
        compiler_params=pltpu.CompilerParams(
            dimension_semantics=("parallel", "parallel"),
            vmem_limit_bytes=_VMEM_LIMIT),
    )(q, kt, qn, kn)
    return out[:, :N, :]


def get_knn_idx(pos, k, offset=1, *, approx=False):
    """pytorch3d.ops.knn_points(pos, pos) equivalent: k nearest neighbours,
    skipping the first `offset` (the point itself)."""
    # TODO(synk): stream the k-smallest selection inside the distance kernel so
    #             the B*N*N matrix never round-trips through HBM.
    dist = pairwise_sqdist(pos)                          # (B, N, N)
    if approx:
        _, idx = jax.lax.approx_min_k(dist, k + offset)  # TPU-native partial top-k
    else:
        _, idx = jax.lax.top_k(-dist, k + offset)        # exact, ascending distance
    return idx[:, :, offset:]                            # (B, N, k)


# --------------------------------------------------------------------------
# Kernel 3: DenseEdgeConv — factored edge features + FC chain + aggregation
# --------------------------------------------------------------------------
def _dense_edge_kernel(*refs, num_mid, aggr, g, d, K, c_out, c_pad):
    knn_ref, x_ref = refs[0], refs[1]
    out_ref = refs[-1]
    params = refs[2:-1]

    tile_n = x_ref.shape[0]
    tnk = tile_n * K

    knn2 = knn_ref[...].reshape(tnk, d)                  # (tnk, d) neighbour feats
    x = x_ref[...]                                       # (tile_n, d) centre feats

    def mm(a, w_ref):
        return jnp.dot(a, w_ref[...], preferred_element_type=jnp.float32)

    # layer_first, algebraically factored (combined weights from the wrapper):
    #   relative_only : relu((knn - x) W + b)          = relu(knn W + x (-W) + b)
    #   full edge feat: relu(x Wx + knn Wk + (knn-x)Wr + b)
    #                 = relu(x (Wx - Wr) + knn (Wk + Wr) + b)
    # x-branch computed once per point, broadcast over the K neighbours.
    wfx, wfk, bf = params[0], params[1], params[2]
    pi = 3
    xb = mm(x, wfx) + bf[...]                            # (tile_n, g)
    h = mm(knn2, wfk).reshape(tile_n, K, g) + xb[:, None, :]
    h = jnp.maximum(h, 0.0)
    slabs = [h.reshape(tnk, g)]                          # oldest ... newest

    # DenseNet mid layers: per-slab split matmuls (weights pre-split in the
    # wrapper, newest slab first) — no lane concats, no accumulator round-trips.
    for j in range(1, num_mid + 1):
        slab_ws = params[pi:pi + j]
        wx, b = params[pi + j], params[pi + j + 1]
        pi += j + 2
        feat = None
        for w_s, hs in zip(slab_ws, reversed(slabs)):
            t = mm(hs, w_s)
            feat = t if feat is None else feat + t
        xb = mm(x, wx) + b[...]
        h = feat.reshape(tile_n, K, g) + xb[:, None, :]
        slabs.append(jnp.maximum(h, 0.0).reshape(tnk, g))

    # layer_last (no activation): reduced over K and written straight to out.
    nl = num_mid + 1
    slab_ws = params[pi:pi + nl]
    wx, b = params[pi + nl], params[pi + nl + 1]
    feat = None
    for w_s, hs in zip(slab_ws, reversed(slabs)):
        t = mm(hs, w_s)
        feat = t if feat is None else feat + t
    h_last = feat.reshape(tile_n, K, g) + (mm(x, wx) + b[...])[:, None, :]

    def red(v3):                                         # aggregate over K
        if aggr == 'max':
            return jnp.max(v3, axis=1)
        if aggr == 'sum':
            return jnp.sum(v3, axis=1)
        return jnp.mean(v3, axis=1)

    # Output layout = [h_last, h_{L-2}, ..., h_0, x]; the x slab is the
    # reduction of K identical copies -> analytic.  One lane-dense store.
    pieces = [red(h_last)]
    for hs in reversed(slabs):
        pieces.append(red(hs.reshape(tile_n, K, g)))
    pieces.append(x * float(K) if aggr == 'sum' else x)
    if c_pad > c_out:
        pieces.append(jnp.zeros((tile_n, c_pad - c_out), jnp.float32))
    out_ref[...] = jnp.concatenate(pieces, axis=-1)


def _split_dense_weights(p, *, d, relative_only):
    """Pre-factor layer_first and split every DenseNet weight into per-slab
    (newest-first) feature blocks + a per-point x block + bias."""
    g = p['w_first'].shape[1]
    num_mid = len(p['w_mid'])
    if relative_only:
        wfx, wfk = -p['w_first'], p['w_first']
    else:
        wx, wk, wr = p['w_first'][:d], p['w_first'][d:2 * d], p['w_first'][2 * d:]
        wfx, wfk = wx - wr, wk + wr
    flat = [wfx, wfk, p['b_first']]
    for j in range(1, num_mid + 1):
        w = p['w_mid'][j - 1]                            # rows: [h_{j-1},...,h_0, x]
        flat += [w[s * g:(s + 1) * g] for s in range(j)]
        flat += [w[j * g:], p['b_mid'][j - 1]]
    nl = num_mid + 1
    wl = p['w_last']                                     # rows: [h_{L-2},...,h_0, x]
    flat += [wl[s * g:(s + 1) * g] for s in range(nl)]
    flat += [wl[nl * g:], p['b_last']]
    return flat, g, num_mid


def _pick_edge_tile(BN, K, c_pad, num_layers, max_tile_n, budget=20 << 20):
    """Pick tile_n under a VMEM budget (lane-padded slabs dominate) with >=2 blocks."""
    kr = _round_up(K, 8)
    per_row = 4 * (2 * kr * 128 + 2 * 128 + 2 * c_pad + (num_layers + 2) * kr * 128)
    cap = max(8, (budget // per_row) // 8 * 8)
    return max(8, min(max_tile_n, cap, _round_up(_cdiv(BN, 2), 8)))


def _dense_edge_conv_from_idx(x, idx, p, *, aggr, relative_only, max_tile_n=512):
    """x: (TB, N, d), idx: (TB, N, K) -> (TB, N, d + L*g)."""
    TB, N, d = x.shape
    K = idx.shape[-1]
    flat_params, g, num_mid = _split_dense_weights(p, d=d, relative_only=relative_only)
    c_out = d + (num_mid + 2) * g
    c_pad = _round_up(c_out, 128)                        # lane-dense output stores

    # TODO(synk): fuse this gather into the kernel (scalar-prefetched idx +
    #             resident per-batch feature block / per-row DMA) so the
    #             K-times-materialized knn_feat never hits HBM.
    knn_feat = jax.vmap(lambda xb, ib: xb[ib])(x, idx)   # (TB, N, K, d)

    BN = TB * N
    tile_n = _pick_edge_tile(BN, K, c_pad, num_mid + 2, max_tile_n)
    bn_pad = _round_up(BN, tile_n)

    knn_flat = knn_feat.reshape(BN, K, d)
    x_flat = x.reshape(BN, d)
    if bn_pad != BN:
        knn_flat = jnp.pad(knn_flat, ((0, bn_pad - BN), (0, 0), (0, 0)))
        x_flat = jnp.pad(x_flat, ((0, bn_pad - BN), (0, 0)))

    weight_specs = [pl.BlockSpec(q.shape, lambda i: (0, 0)) for q in flat_params]
    kernel = functools.partial(_dense_edge_kernel, num_mid=num_mid, aggr=aggr,
                               g=g, d=d, K=K, c_out=c_out, c_pad=c_pad)
    out = pl.pallas_call(
        kernel,
        out_shape=jax.ShapeDtypeStruct((bn_pad, c_pad), jnp.float32),
        grid=(bn_pad // tile_n,),
        in_specs=[pl.BlockSpec((tile_n, K, d), lambda i: (i, 0, 0)),
                  pl.BlockSpec((tile_n, d), lambda i: (i, 0))] + weight_specs,
        out_specs=pl.BlockSpec((tile_n, c_pad), lambda i: (i, 0)),
        compiler_params=pltpu.CompilerParams(
            dimension_semantics=("parallel",),
            vmem_limit_bytes=_VMEM_LIMIT),
    )(knn_flat, x_flat, *flat_params)
    return out[:BN, :c_out].reshape(TB, N, c_out)


def dense_edge_conv(x, pos, p, *, knn, aggr='mean', relative_only=False,
                    max_tile_n=512, approx_knn=False):
    """DenseEdgeConv_snn_NoisySAN.forward on (TB, N, d) features."""
    idx = get_knn_idx(pos, knn, offset=1, approx=approx_knn)
    return _dense_edge_conv_from_idx(x, idx, p, aggr=aggr,
                                     relative_only=relative_only,
                                     max_tile_n=max_tile_n)


# --------------------------------------------------------------------------
# FeatureExtraction_snn_Noisy forward (dynamic graph)
# --------------------------------------------------------------------------
def feature_extraction_forward(x, params, *, knn, aggr='mean', approx_knn=False):
    """x: (T, B, N, in_channels) -> (T, B, N, conv_channels + L*growth)."""
    T, B, N, _ = x.shape
    h = x.reshape(T * B, N, -1)
    for i, p in enumerate(params):
        cin = h.shape[-1]
        # transforms[i]: activation=None on the first, SNN(~ReLU) afterwards.
        ht = linear_pallas(h.reshape(T * B * N, cin), p['trans_w'], p['trans_b'],
                           relu=(i > 0))
        h = ht.reshape(T * B, N, -1)
        # dynamic graph: KNN in the transformed feature space (pos = h).
        h = dense_edge_conv(h, h, p, knn=knn, aggr=aggr,
                            relative_only=(i == 0), approx_knn=approx_knn)
    return h.reshape(T, B, N, -1)


# --------------------------------------------------------------------------
# Deterministic parameter init (shapes from the PyTorch constructors)
# --------------------------------------------------------------------------
def init_params(key, *, in_channels, num_convs, conv_channels,
                num_fc_layers, growth_rate):
    assert num_fc_layers > 2

    def lin(k, cin, cout):
        kw, kb = jax.random.split(k)
        w = jax.random.normal(kw, (cin, cout), jnp.float32) * (cin ** -0.5)
        b = jax.random.normal(kb, (1, cout), jnp.float32) * 0.05
        return w, b

    params = []
    cin = in_channels
    conv_keys = jax.random.split(key, num_convs)
    for i in range(num_convs):
        d, g, L = conv_channels, growth_rate, num_fc_layers
        ks = jax.random.split(conv_keys[i], L + 1)
        tw, tb = lin(ks[0], cin, d)                      # transforms[i]
        d_e = d if i == 0 else 3 * d                     # relative_feat_only on conv 0
        wf, bf = lin(ks[1], d_e, g)                      # layer_first
        w_mid, b_mid = [], []
        for j in range(1, L - 1):                        # self.layers
            w, b = lin(ks[1 + j], d + j * g, g)
            w_mid.append(w)
            b_mid.append(b)
        wl, bl = lin(ks[L], d + (L - 1) * g, g)          # layer_last
        params.append(dict(trans_w=tw, trans_b=tb, w_first=wf, b_first=bf,
                           w_mid=w_mid, b_mid=b_mid, w_last=wl, b_last=bl))
        cin = d + L * g                                  # conv.out_channels
    return params


# --------------------------------------------------------------------------
# Pure-JAX edge-conv reference (shared KNN idx -> no tie ambiguity)
# --------------------------------------------------------------------------
def edge_conv_reference(x, idx, p, *, aggr, relative_only):
    knn_feat = jax.vmap(lambda xb, ib: xb[ib])(x, idx)               # (TB,N,K,d)
    x_t = jnp.broadcast_to(x[:, :, None, :], knn_feat.shape)
    if relative_only:
        ef = knn_feat - x_t
    else:
        ef = jnp.concatenate([x_t, knn_feat, knn_feat - x_t], axis=-1)

    def fc(y, w, b, act):
        r = jnp.einsum('bnkc,cg->bnkg', y, w) + b[0]
        return jnp.maximum(r, 0.0) if act else r

    y = jnp.concatenate([fc(ef, p['w_first'], p['b_first'], True), x_t], axis=-1)
    for w, b in zip(p['w_mid'], p['b_mid']):
        y = jnp.concatenate([fc(y, w, b, True), y], axis=-1)
    y = jnp.concatenate([fc(y, p['w_last'], p['b_last'], False), y], axis=-1)
    if aggr == 'max':
        return jnp.max(y, axis=2)
    if aggr == 'sum':
        return jnp.sum(y, axis=2)
    return jnp.mean(y, axis=2)


if __name__ == "__main__":
    # Small shapes consistent with FeatureExtraction_snn_Noisy
    # (defaults: T=4, in=3, conv_channels=24, num_convs=4, L=3, growth=12,
    #  knn=16, aggr='mean').
    T, B, N = 2, 2, 32
    in_channels = 3
    num_convs = 2
    conv_channels = 16
    num_fc_layers = 3
    growth_rate = 8
    knn = 8
    aggr = 'mean'

    key = jax.random.PRNGKey(0)
    k_x, k_p, k_t = jax.random.split(key, 3)
    x = jax.random.normal(k_x, (T, B, N, in_channels), jnp.float32)
    params = init_params(k_p, in_channels=in_channels, num_convs=num_convs,
                         conv_channels=conv_channels,
                         num_fc_layers=num_fc_layers, growth_rate=growth_rate)

    out = feature_extraction_forward(x, params, knn=knn, aggr=aggr)
    out = jax.block_until_ready(out)
    out_ch = conv_channels + num_fc_layers * growth_rate
    assert out.shape == (T, B, N, out_ch), out.shape
    assert bool(jnp.all(jnp.isfinite(out)))

    # --- Check 1: tiled pairwise-distance kernel vs mirrored JAX reference ---
    kp1, kp2, kp3 = jax.random.split(k_t, 3)
    pos = jax.random.normal(kp1, (2, 500, 8), jnp.float32)   # odd N -> row padding
    qn = jnp.sum(pos * pos, axis=-1, keepdims=True)
    cross_ref = jnp.einsum('bnd,bmd->bnm',
                           (pos * -2.0).astype(jnp.bfloat16),
                           pos.astype(jnp.bfloat16),
                           preferred_element_type=jnp.float32)
    dist_ref = qn + jnp.swapaxes(qn, 1, 2) + cross_ref
    assert jnp.allclose(pairwise_sqdist(pos), dist_ref, atol=2e-3, rtol=2e-3)

    # --- Check 2: row-tiled linear kernel vs pure JAX (odd rows -> padding) ---
    xr = jax.random.normal(kp2, (300, 3), jnp.float32)
    ref = jnp.maximum(xr @ params[0]['trans_w'] + params[0]['trans_b'][0], 0.0)
    got = linear_pallas(xr, params[0]['trans_w'], params[0]['trans_b'], relu=True)
    assert jnp.allclose(got, ref, atol=1e-3, rtol=1e-3)

    # --- Check 3: DenseEdgeConv kernel vs pure JAX with shared KNN indices ---
    xc = jax.random.normal(kp3, (T * B, N, conv_channels), jnp.float32)
    idx = get_knn_idx(xc, knn, offset=1)
    for p_i, rel_only, ag in ((params[0], True, 'mean'),
                              (params[1], False, 'mean'),
                              (params[1], False, 'max'),
                              (params[1], False, 'sum')):
        got = _dense_edge_conv_from_idx(xc, idx, p_i, aggr=ag,
                                        relative_only=rel_only)
        ref = edge_conv_reference(xc, idx, p_i, aggr=ag,
                                  relative_only=rel_only)
        assert jnp.allclose(got, ref, atol=2e-3, rtol=2e-3), (rel_only, ag)

    print("KERNEL_OK")
</pallas_src>

<mosaic_0001>
module attributes {stable_mosaic.version = 11 : i64} {
  func.func @_linear_kernel(%arg0: i32, %arg1: memref<64x3xf32, #tpu.memory_space<vmem>>, %arg2: memref<3x16xf32, #tpu.memory_space<vmem>>, %arg3: memref<1x16xf32, #tpu.memory_space<vmem>>, %arg4: memref<64x16xf32, #tpu.memory_space<vmem>>) attributes {dimension_semantics = [#tpu.dimension_semantics<parallel>], iteration_bounds = array<i64: 2>, scalar_prefetch = 0 : i64, scratch_operands = 0 : i64, tpu.core_type = #tpu.core_type<tc>, window_params = [{transform_indices = @transform_0, window_bounds = array<i64: 64, 3>}, {pipeline_mode = #tpu.pipeline_mode<synchronous>, transform_indices = @transform_1, window_bounds = array<i64: 3, 16>}, {pipeline_mode = #tpu.pipeline_mode<synchronous>, transform_indices = @transform_2, window_bounds = array<i64: 1, 16>}, {transform_indices = @transform_3, window_bounds = array<i64: 64, 16>}]} {
    %c0 = arith.constant 0 : index
    %c0_0 = arith.constant 0 : index
    %0 = vector.load %arg1[%c0, %c0_0] : memref<64x3xf32, #tpu.memory_space<vmem>>, vector<64x3xf32>
    %c0_1 = arith.constant 0 : index
    %c0_2 = arith.constant 0 : index
    %1 = vector.load %arg2[%c0_1, %c0_2] : memref<3x16xf32, #tpu.memory_space<vmem>>, vector<3x16xf32>
    %cst = arith.constant dense<0.000000e+00> : vector<64x16xf32>
    %2 = tpu.matmul %0, %1, %cst {dimension_numbers = #tpu.dot_dimension_numbers<[1], [0], [0], [1], [0, 0, 1, 1], [], []>} : vector<64x3xf32>, vector<3x16xf32>, vector<64x16xf32> -> vector<64x16xf32>
    %c0_3 = arith.constant 0 : index
    %c0_4 = arith.constant 0 : index
    %3 = vector.load %arg3[%c0_3, %c0_4] : memref<1x16xf32, #tpu.memory_space<vmem>>, vector<1x16xf32>
    %4 = vector.broadcast %3 : vector<1x16xf32> to vector<64x16xf32>
    %5 = arith.addf %2, %4 : vector<64x16xf32>
    %c0_5 = arith.constant 0 : index
    %c0_6 = arith.constant 0 : index
    %6 = vector.load %arg4[%c0_5, %c0_6] : memref<64x16xf32, #tpu.memory_space<vmem>>, vector<64x16xf32>
    tpu.vector_store %arg4[%c0_5, %c0_6], %5 {strides = array<i32>} : memref<64x16xf32, #tpu.memory_space<vmem>>, vector<64x16xf32>,
    return
  }
  func.func @transform_0(%arg0: i32) -> (i32, i32) {
    %c0_i32 = arith.constant 0 : i32
    %c0_i32_0 = arith.constant 0 : i32
    return %arg0, %c0_i32 : i32, i32
  }
  func.func @transform_1(%arg0: i32) -> (i32, i32) {
    %c0_i32 = arith.constant 0 : i32
    %c0_i32_0 = arith.constant 0 : i32
    %c0_i32_1 = arith.constant 0 : i32
    return %c0_i32, %c0_i32_0 : i32, i32
  }
  func.func @transform_2(%arg0: i32) -> (i32, i32) {
    %c0_i32 = arith.constant 0 : i32
    %c0_i32_0 = arith.constant 0 : i32
    %c0_i32_1 = arith.constant 0 : i32
    return %c0_i32, %c0_i32_0 : i32, i32
  }
  func.func @transform_3(%arg0: i32) -> (i32, i32) {
    %c0_i32 = arith.constant 0 : i32
    %c0_i32_0 = arith.constant 0 : i32
    return %arg0, %c0_i32 : i32, i32
  }
}

</mosaic_0001>

<bundles_post_ra>
// kernel: tpu_custom_call.1
= control target key start
LH: loop header
LB: loop body
LE: loop exit
PB: predicated region body
PF: predicated region fallthrough
CT: control target
= control target key end

     0   :  { %s471_s12 = smov 0   ;;  %s510_s0 = inlined_call_operand.vmem [shape: f32[128,3], index: 0, kind: input, shape index: {}]   ;;  %s511_s1 = inlined_call_operand.vmem [shape: f32[3,16], index: 1, kind: input, shape index: {}]   ;;  %s512_s2 = inlined_call_operand.vmem [shape: f32[1,16], index: 2, kind: input, shape index: {}]   ;;  %s513_s3 = inlined_call_operand.vmem [shape: f32[128,16], index: 3, kind: output, shape index: {}]  }
   0x1 LB: > { %s389_s13 = sadd.s32 4294967295, %s449_s12   ;;  %p393_p0 = scmp.ge.s32.totalorder %s449_s12, 1  ;;  %s449_s12 = sphi %s471_s12, %s13_s12  }
   0x2   : > { %p138_p1 = scmp.lt.s32.totalorder %s449_s12, 3 }
   0x4   : > { %p139_p2 = pnand %p393_p0, %p138_p1 }
   0x5   : > { %v182_v0 = vld [vmem:[%s511_s1] sm:$0x7] (!%p139_p2)  ;;  %vm215_vm0 = vcmask (!%p139_p2), 1042432   ;;  %s394_s16 = sshll.u32 (!%p139_p2), %s389_s13, 3  ;;  %vm190_vm1 = vcmask (!%p139_p2), 23552   ;;  %vm324_vm2 = vcmask (!%p139_p2), 130048  }
   0x6   : > { %142 = sbr.rel (%p139_p2) target bundleno = 239 (0xef), region = 32  ;;  %419 = vmatprep.subr.msk.mxu0 (!%p139_p2), %vm215_vm0, %v182_v0  ;;  %433 = vmatprep.subr.msk.mxu1 (!%p139_p2), %vm215_vm0, %v182_v0  ;;  %p163_p3 = scmp.lt.s32.totalorder (!%p139_p2), %s394_s16, 15  ;;  %v398_v9 = vld [vmem:[%s512_s2] ss:$0 sm:$0xff] (!%p139_p2) }
   0x7   : > { %420 = vmatpush3.msk.msra.mxu0 (!%p139_p2), %vm215_vm0, %v182_v0  ;;  %434 = vmatpush3.msk.msra.mxu1 (!%p139_p2), %vm215_vm0, %v182_v0 }
   0xd   : > { %s515_s16 = smov (!%p163_p3, %s394_s16), 15 }
   0xe   : > { %s395_s17 = sshll.u32 %s515_s16, 3 }
   0xf   : > { %s166_s20 = scalar_lea.vmem %s510_s0, %s395_s17  ;;  %s172_s25 = scalar_lea.vmem %s513_s3, %s395_s17 }
  0x10   : > { %v174_v1 = vld [vmem:[%s166_s20] sm:$0xff]  ;;  %v175_v3 = vld [vmem:[%s166_s20 + $0x8] sm:$0xff]  ;;  %v176_v5 = vld [vmem:[%s166_s20 + $0x10] sm:$0xff] }
  0x11   : > { %v178_v2 = vld [vmem:[%s166_s20 + $0x20] sm:$0xff]  ;;  %421 = vmatprep.mubr.msk.f32.mxu0 %vm190_vm1, %v174_v1  ;;  %v179_v4 = vld [vmem:[%s166_s20 + $0x28] sm:$0xff]  ;;  %v180_v6 = vld [vmem:[%s166_s20 + $0x30] sm:$0xff] }
  0x12   : > { %427 = vmatprep.mubr.msk.f32.mxu1 %vm190_vm1, %v178_v2  ;;  %422 = vmatmul.mubr.msk.f32.vlgmr.msra.gmra.mrb[0].mxu0 %vm190_vm1, %v175_v3  ;;  %v177_v7 = vld [vmem:[%s166_s20 + $0x18] sm:$0xff] }
  0x13   : > { %428 = vmatmul.mubr.msk.f32.vlgmr.msra.gmra.mrb[0].mxu1 %vm190_vm1, %v179_v4  ;;  %424 = vmatprep.mubr.msk.f32.mxu0 %vm190_vm1, %v176_v5  ;;  %v181_v8 = vld [vmem:[%s166_s20 + $0x38] sm:$0xff] }
  0x14   : > { %430 = vmatprep.mubr.msk.f32.mxu1 %vm190_vm1, %v180_v6 }
  0x16   : > { %425 = vmatmul.mubr.msk.f32.gmra.mrb[2].mxu0 %vm190_vm1, %v177_v7 }
  0x17   : > { %431 = vmatmul.mubr.msk.f32.gmra.mrb[2].mxu1 %vm190_vm1, %v181_v8 }
  0xe5   : > { %v423_v10 = vpop.f32.mrb[0].mxu0 }
  0xe6   : > { %v429_v11 = vpop.f32.mrb[0].mxu1  ;;  %v291_v12 = vadd.f32 %v423_v10, %v398_v9  ;;  %v285_v14 = vpop.f32.mrb[1].mxu0 }
  0xe7   : > { %v311_v13 = vadd.f32 %v429_v11, %v398_v9  ;;  %v305_v15 = vpop.f32.mrb[1].mxu1  ;;  %v286_v16 = vadd.f32 %v398_v9, %v285_v14 }
  0xe8   : > { %v306_v17 = vadd.f32 %v398_v9, %v305_v15  ;;  %326 = vst.msk [vmem:[%s172_s25 + $0x8] sm:$0xff] %vm324_vm2, %v291_v12 }
  0xe9   : > { %330 = vst.msk [vmem:[%s172_s25 + $0x28] sm:$0xff] %vm324_vm2, %v311_v13  ;;  %325 = vst.msk [vmem:[%s172_s25] sm:$0xff] %vm324_vm2, %v286_v16  ;;  %v426_v18 = vpop.f32.mrb[2].mxu0 }
  0xea   : > { %329 = vst.msk [vmem:[%s172_s25 + $0x20] sm:$0xff] %vm324_vm2, %v306_v17  ;;  %v432_v19 = vpop.f32.mrb[2].mxu1  ;;  %v301_v20 = vadd.f32 %v426_v18, %v398_v9  ;;  %v295_v22 = vpop.f32.mrb[3].mxu0 }
  0xeb   : > { %v321_v21 = vadd.f32 %v432_v19, %v398_v9  ;;  %v315_v23 = vpop.f32.mrb[3].mxu1  ;;  %v296_v24 = vadd.f32 %v398_v9, %v295_v22 }
  0xec   : > { %v316_v25 = vadd.f32 %v398_v9, %v315_v23  ;;  %328 = vst.msk [vmem:[%s172_s25 + $0x18] sm:$0xff] %vm324_vm2, %v301_v20 }
  0xed   : > { %332 = vst.msk [vmem:[%s172_s25 + $0x38] sm:$0xff] %vm324_vm2, %v321_v21  ;;  %327 = vst.msk [vmem:[%s172_s25 + $0x10] sm:$0xff] %vm324_vm2, %v296_v24 }
  0xee   : > { %331 = vst.msk [vmem:[%s172_s25 + $0x30] sm:$0xff] %vm324_vm2, %v316_v25 }
  0xef PF: > { %s13_s12 = sadd.s32 1, %s449_s12  }
  0xf0   : > { %p10_p4 = scmp.ge.s32.totalorder %s13_s12, 4  }
  0xf2   :  { %12 = sbr.rel (!%p10_p4) target bundleno = 1 (0x1), region = 62 }

</bundles_post_ra>
